<compile_context>
chip_gen: v5e
topology: v5e:2x2
jax: 0.10.0
libtpu: 0.0.40
codegen_flags: <defaults>
</compile_context>

<pallas_src>
import itertools

import jax
import jax.numpy as jnp
import numpy as np
from jax.experimental import pallas as pl
from jax.experimental.pallas import tpu as pltpu


def _round_up(x, m):
    return ((x + m - 1) // m) * m


def _cost_kernel(rl_ref, el_ref, wr_ref, we_ref, cost_ref):
    # rl_ref: (R, E_pad, S) role logits with the entity axis on sublanes.
    rl = rl_ref[...]
    m = jnp.max(rl, axis=1, keepdims=True)                  # (R, 1, S)
    p = jnp.exp(rl - m)                                     # (R, E, S)
    z = jnp.sum(p, axis=1, keepdims=True)                   # (R, 1, S)
    p = p * pl.reciprocal(z, approx=True)                   # softmax over entities (EUP div)
    r, e, s = p.shape
    p_flat = p.reshape(r * e, s)                            # layout-free collapse (E_pad % 8 == 0)

    # el_ref: (C, S) event logits with the event-type axis on sublanes.
    # NOTE: the PyTorch reference applies .softmax(-1) to pred_doc_event_logps
    # (even though they are already log-probs); we match that exactly.
    el = el_ref[...]
    me = jnp.max(el, axis=0, keepdims=True)                 # (1, S)
    pe = jnp.exp(el - me)                                   # (C, S)
    ze = jnp.sum(pe, axis=0, keepdims=True)                 # (1, S)
    pe = pe * pl.reciprocal(ze, approx=True)                # softmax over event types

    # Cost weights (-cost_role, -cost_event_type) are pre-folded into wr/we
    # (bf16, built on the host), so there is no scale-and-add epilogue:
    # one K=R*E MXU pass for the role gather+sum, one tiny event matmul, one add.
    cost = jnp.dot(wr_ref[...], p_flat.astype(jnp.bfloat16),
                   preferred_element_type=jnp.float32)      # (T_pad, S)
    cost = cost + jnp.dot(we_ref[...], pe.astype(jnp.bfloat16),
                          preferred_element_type=jnp.float32)
    cost_ref[...] = cost


def _linear_sum_assignment_bruteforce(cost):
    # TODO(synk): Hungarian LAP (scipy.optimize.linear_sum_assignment) has no
    # clean Pallas equivalent; exact exhaustive search on host for small sizes.
    cost = np.asarray(cost)
    n_rows, n_cols = cost.shape
    if n_rows >= n_cols:
        best, best_rows = None, None
        for rows in itertools.permutations(range(n_rows), n_cols):
            total = cost[list(rows), list(range(n_cols))].sum()
            if best is None or total < best:
                best, best_rows = total, rows
        pairs = sorted(zip(best_rows, range(n_cols)))
    else:
        best, best_cols = None, None
        for cols in itertools.permutations(range(n_cols), n_rows):
            total = cost[list(range(n_rows)), list(cols)].sum()
            if best is None or total < best:
                best, best_cols = total, cols
        pairs = sorted(zip(range(n_rows), best_cols))
    row_ind = np.array([p[0] for p in pairs], dtype=np.int64)
    col_ind = np.array([p[1] for p in pairs], dtype=np.int64)
    return row_ind, col_ind


class HungarianMatcher:
    def __init__(self, cost_weight, matcher, num_event_type):
        self.cost_event_type = float(cost_weight['event_type'])
        self.cost_role = float(cost_weight['role'])
        self.matcher = matcher
        self.num_event_type = num_event_type

    def cost_matrix(self, outputs, targets):
        assert self.matcher == 'avg'
        pred_role_logits = jnp.asarray(outputs['pred_role_logits'],
                                       dtype=jnp.float32)          # (S, R, E)
        pred_event_logps = jnp.asarray(outputs['pred_doc_event_logps'],
                                       dtype=jnp.float32)          # (S, C)
        S, R, E = pred_role_logits.shape
        C = pred_event_logps.shape[-1]

        gold_event = jnp.asarray(targets['doc_event_label'], dtype=jnp.int32)
        if self.num_event_type == 2:
            gold_event = jnp.zeros_like(gold_event)
        gold_role_lists = [rl for rl in targets['role_label'] if rl is not None]
        gold_role = jnp.asarray(gold_role_lists, dtype=jnp.int32)   # (T, R)
        T = gold_role.shape[0]

        # ---- host-side glue (all tiny): pad / transpose / weighted one-hots ----
        E_pad = _round_up(E, 8)          # entity (sublane) axis tile-aligned
        T_pad = _round_up(max(T, 1), 8)  # output rows tile-aligned

        rl = pred_role_logits
        if E_pad != E:                   # padded entities get ~0 softmax prob
            rl = jnp.pad(rl, ((0, 0), (0, 0), (0, E_pad - E)),
                         constant_values=-1e30)
        rl_t = jnp.transpose(rl, (1, 2, 0))                   # (R, E_pad, S)
        el_t = jnp.transpose(pred_event_logps, (1, 0))        # (C, S)

        # weighted gold one-hots (cost weights folded in), bf16 for the MXU
        wr = jax.nn.one_hot(gold_role, E_pad, dtype=jnp.float32)
        wr = (-self.cost_role) * wr.reshape(T, R * E_pad)
        wr = jnp.pad(wr, ((0, T_pad - T), (0, 0))).astype(jnp.bfloat16)  # (T_pad, R*E_pad)
        we = (-self.cost_event_type) * jax.nn.one_hot(gold_event, C,
                                                      dtype=jnp.float32)
        we = jnp.pad(we, ((0, T_pad - T), (0, 0))).astype(jnp.bfloat16)  # (T_pad, C)

        # TODO(synk): for many documents, stack them on a leading "parallel"
        # grid axis (one pallas_call per batch, not per document) to amortize
        # launch + host-sync overhead and use v7x's second TensorCore.
        cost_t = pl.pallas_call(
            _cost_kernel,
            out_shape=jax.ShapeDtypeStruct((T_pad, S), jnp.float32),
            grid=(1,),
            in_specs=[
                pl.BlockSpec((R, E_pad, S), lambda i: (0, 0, 0)),
                pl.BlockSpec((C, S), lambda i: (0, 0)),
                pl.BlockSpec((T_pad, R * E_pad), lambda i: (0, 0)),
                pl.BlockSpec((T_pad, C), lambda i: (0, 0)),
            ],
            out_specs=pl.BlockSpec((T_pad, S), lambda i: (0, 0)),
            compiler_params=pltpu.CompilerParams(
                dimension_semantics=("parallel",)),
        )(rl_t, el_t, wr, we)                                  # (T_pad, S)

        return cost_t[:T, :].T                                 # (S, T)

    def __call__(self, outputs, targets):
        all_cost = jax.block_until_ready(self.cost_matrix(outputs, targets))
        row_ind, col_ind = _linear_sum_assignment_bruteforce(np.asarray(all_cost))
        # matches torch.as_tensor(indices, dtype=torch.int64) -> shape (2, k)
        return np.stack([row_ind, col_ind]).astype(np.int64)


if __name__ == "__main__":
    key = jax.random.PRNGKey(0)
    S, R, E, C, T = 8, 8, 16, 5, 4   # num_sets, num_roles, num_entities,
                                     # num_event_type, num_gold_events
    k1, k2, k3, k4 = jax.random.split(key, 4)

    pred_role_logits = jax.random.normal(k1, (S, R, E), dtype=jnp.float32)
    pred_event_logps = jax.nn.log_softmax(
        jax.random.normal(k2, (S, C), dtype=jnp.float32), axis=-1)

    gold_event = [int(v) for v in np.asarray(jax.random.randint(k3, (T,), 0, C))]
    gold_role = [
        [int(v) for v in np.asarray(
            jax.random.randint(jax.random.fold_in(k4, t), (R,), 0, E))]
        for t in range(T)
    ]

    outputs = {'pred_role_logits': pred_role_logits,
               'pred_doc_event_logps': pred_event_logps}
    targets = {'doc_event_label': gold_event, 'role_label': gold_role}

    cost_weight = {'event_type': 1.0, 'role': 0.5}
    matcher = HungarianMatcher(cost_weight, 'avg', num_event_type=C)

    # Run the Pallas kernel and block on result.
    cost = jax.block_until_ready(matcher.cost_matrix(outputs, targets))

    # pure-JAX f32 reference for the cost matrix
    pr = jax.nn.softmax(pred_role_logits, axis=-1)
    pe = jax.nn.softmax(pred_event_logps, axis=-1)
    g_role = jnp.asarray(gold_role, dtype=jnp.int32)      # (T, R)
    g_event = jnp.asarray(gold_event, dtype=jnp.int32)    # (T,)
    gathered = pr[:, jnp.arange(R)[None, :], g_role]      # (S, T, R)
    role_cost_ref = -cost_weight['role'] * jnp.sum(gathered, axis=-1)
    event_cost_ref = -cost_weight['event_type'] * pe[:, g_event]
    ref = role_cost_ref + event_cost_ref

    assert cost.shape == (S, T)
    # bf16 matmul operands + approx EUP reciprocal -> loose (but structure-
    # distinguishing) tolerance; the cost matrix only feeds an argmin matching.
    assert np.allclose(np.asarray(cost), np.asarray(ref), atol=5e-2, rtol=2e-2), \
        "Pallas cost matrix mismatch vs reference"

    indices = matcher(outputs, targets)
    assert indices.shape == (2, min(S, T)) and indices.dtype == np.int64

    print("KERNEL_OK")
</pallas_src>

<mosaic_0001>
module attributes {stable_mosaic.version = 11 : i64} {
  func.func @_cost_kernel(%arg0: i32, %arg1: memref<8x16x8xf32, #tpu.memory_space<vmem>>, %arg2: memref<5x8xf32, #tpu.memory_space<vmem>>, %arg3: memref<8x128xbf16, #tpu.memory_space<vmem>>, %arg4: memref<8x5xbf16, #tpu.memory_space<vmem>>, %arg5: memref<8x8xf32, #tpu.memory_space<vmem>>) attributes {dimension_semantics = [#tpu.dimension_semantics<parallel>], iteration_bounds = array<i64: 1>, scalar_prefetch = 0 : i64, scratch_operands = 0 : i64, tpu.core_type = #tpu.core_type<tc>, window_params = [{pipeline_mode = #tpu.pipeline_mode<synchronous>, transform_indices = @transform_0, window_bounds = array<i64: 8, 16, 8>}, {pipeline_mode = #tpu.pipeline_mode<synchronous>, transform_indices = @transform_1, window_bounds = array<i64: 5, 8>}, {pipeline_mode = #tpu.pipeline_mode<synchronous>, transform_indices = @transform_2, window_bounds = array<i64: 8, 128>}, {pipeline_mode = #tpu.pipeline_mode<synchronous>, transform_indices = @transform_3, window_bounds = array<i64: 8, 5>}, {pipeline_mode = #tpu.pipeline_mode<synchronous>, transform_indices = @transform_4, window_bounds = array<i64: 8, 8>}]} {
    %c0 = arith.constant 0 : index
    %c0_0 = arith.constant 0 : index
    %c0_1 = arith.constant 0 : index
    %0 = vector.load %arg1[%c0, %c0_0, %c0_1] : memref<8x16x8xf32, #tpu.memory_space<vmem>>, vector<8x16x8xf32>
    %cst = arith.constant dense<0xFF800000> : vector<8x8xf32>
    %1 = vector.multi_reduction <maximumf>, %0, %cst [1] : vector<8x16x8xf32> to vector<8x8xf32>
    %2 = vector.shape_cast %1 : vector<8x8xf32> to vector<8x1x8xf32>
    %3 = vector.broadcast %2 : vector<8x1x8xf32> to vector<8x16x8xf32>
    %4 = arith.subf %0, %3 : vector<8x16x8xf32>
    %5 = math.exp %4 : vector<8x16x8xf32>
    %cst_2 = arith.constant dense<0.000000e+00> : vector<8x8xf32>
    %6 = vector.multi_reduction <add>, %5, %cst_2 [1] : vector<8x16x8xf32> to vector<8x8xf32>
    %7 = vector.shape_cast %6 : vector<8x8xf32> to vector<8x1x8xf32>
    %8 = tpu.reciprocal %7 {approx = true} : vector<8x1x8xf32> -> vector<8x1x8xf32>
    %9 = vector.broadcast %8 : vector<8x1x8xf32> to vector<8x16x8xf32>
    %10 = arith.mulf %5, %9 : vector<8x16x8xf32>
    %11 = vector.shape_cast %10 : vector<8x16x8xf32> to vector<128x8xf32>
    %c0_3 = arith.constant 0 : index
    %c0_4 = arith.constant 0 : index
    %12 = vector.load %arg2[%c0_3, %c0_4] : memref<5x8xf32, #tpu.memory_space<vmem>>, vector<5x8xf32>
    %cst_5 = arith.constant dense<0xFF800000> : vector<8xf32>
    %13 = vector.multi_reduction <maximumf>, %12, %cst_5 [0] : vector<5x8xf32> to vector<8xf32>
    %14 = vector.shape_cast %13 : vector<8xf32> to vector<1x8xf32>
    %15 = vector.broadcast %14 : vector<1x8xf32> to vector<5x8xf32>
    %16 = arith.subf %12, %15 : vector<5x8xf32>
    %17 = math.exp %16 : vector<5x8xf32>
    %cst_6 = arith.constant dense<0.000000e+00> : vector<8xf32>
    %18 = vector.multi_reduction <add>, %17, %cst_6 [0] : vector<5x8xf32> to vector<8xf32>
    %19 = vector.shape_cast %18 : vector<8xf32> to vector<1x8xf32>
    %20 = tpu.reciprocal %19 {approx = true} : vector<1x8xf32> -> vector<1x8xf32>
    %21 = vector.broadcast %20 : vector<1x8xf32> to vector<5x8xf32>
    %22 = arith.mulf %17, %21 : vector<5x8xf32>
    %c0_7 = arith.constant 0 : index
    %c0_8 = arith.constant 0 : index
    %23 = vector.load %arg3[%c0_7, %c0_8] : memref<8x128xbf16, #tpu.memory_space<vmem>>, vector<8x128xbf16>
    %24 = arith.truncf %11 : vector<128x8xf32> to vector<128x8xbf16>
    %cst_9 = arith.constant dense<0.000000e+00> : vector<8x8xf32>
    %25 = tpu.matmul %23, %24, %cst_9 {dimension_numbers = #tpu.dot_dimension_numbers<[1], [0], [0], [1], [0, 0, 1, 1], [], []>} : vector<8x128xbf16>, vector<128x8xbf16>, vector<8x8xf32> -> vector<8x8xf32>
    %c0_10 = arith.constant 0 : index
    %c0_11 = arith.constant 0 : index
    %26 = vector.load %arg4[%c0_10, %c0_11] : memref<8x5xbf16, #tpu.memory_space<vmem>>, vector<8x5xbf16>
    %27 = arith.truncf %22 : vector<5x8xf32> to vector<5x8xbf16>
    %cst_12 = arith.constant dense<0.000000e+00> : vector<8x8xf32>
    %28 = tpu.matmul %26, %27, %cst_12 {dimension_numbers = #tpu.dot_dimension_numbers<[1], [0], [0], [1], [0, 0, 1, 1], [], []>} : vector<8x5xbf16>, vector<5x8xbf16>, vector<8x8xf32> -> vector<8x8xf32>
    %29 = arith.addf %25, %28 : vector<8x8xf32>
    %c0_13 = arith.constant 0 : index
    %c0_14 = arith.constant 0 : index
    %30 = vector.load %arg5[%c0_13, %c0_14] : memref<8x8xf32, #tpu.memory_space<vmem>>, vector<8x8xf32>
    tpu.vector_store %arg5[%c0_13, %c0_14], %29 {strides = array<i32>} : memref<8x8xf32, #tpu.memory_space<vmem>>, vector<8x8xf32>,
    return
  }
  func.func @transform_0(%arg0: i32) -> (i32, i32, i32) {
    %c0_i32 = arith.constant 0 : i32
    %c0_i32_0 = arith.constant 0 : i32
    %c0_i32_1 = arith.constant 0 : i32
    %c0_i32_2 = arith.constant 0 : i32
    return %c0_i32, %c0_i32_0, %c0_i32_1 : i32, i32, i32
  }
  func.func @transform_1(%arg0: i32) -> (i32, i32) {
    %c0_i32 = arith.constant 0 : i32
    %c0_i32_0 = arith.constant 0 : i32
    %c0_i32_1 = arith.constant 0 : i32
    return %c0_i32, %c0_i32_0 : i32, i32
  }
  func.func @transform_2(%arg0: i32) -> (i32, i32) {
    %c0_i32 = arith.constant 0 : i32
    %c0_i32_0 = arith.constant 0 : i32
    %c0_i32_1 = arith.constant 0 : i32
    return %c0_i32, %c0_i32_0 : i32, i32
  }
  func.func @transform_3(%arg0: i32) -> (i32, i32) {
    %c0_i32 = arith.constant 0 : i32
    %c0_i32_0 = arith.constant 0 : i32
    %c0_i32_1 = arith.constant 0 : i32
    return %c0_i32, %c0_i32_0 : i32, i32
  }
  func.func @transform_4(%arg0: i32) -> (i32, i32) {
    %c0_i32 = arith.constant 0 : i32
    %c0_i32_0 = arith.constant 0 : i32
    %c0_i32_1 = arith.constant 0 : i32
    return %c0_i32, %c0_i32_0 : i32, i32
  }
}

</mosaic_0001>

<bundles_post_ra>
// kernel: tpu_custom_call.1
= control target key start
LH: loop header
LB: loop body
LE: loop exit
PB: predicated region body
PF: predicated region fallthrough
CT: control target
= control target key end

     0   :  { %vm35_vm0 = vcmask 64512   ;;  %vm253_vm1 = vcmask 61440   ;;  %s670_s0 = inlined_call_operand.vmem [shape: f32[8,16,8], index: 0, kind: input, shape index: {}]   ;;  %s671_s1 = inlined_call_operand.vmem [shape: f32[5,8], index: 1, kind: input, shape index: {}]   ;;  %s672_s2 = inlined_call_operand.vmem [shape: bf16[8,128], index: 2, kind: input, shape index: {}]   ;;  %s673_s3 = inlined_call_operand.vmem [shape: bf16[8,5], index: 3, kind: input, shape index: {}]   ;;  %s674_s4 = inlined_call_operand.hbm [shape: f32[8,8], index: 4, kind: output, shape index: {}]  }
   0x1   :  { %v449_v0 = vld [vmem:[%s670_s0 + $0x70] sm:$0xff]  ;;  %v454_v1 = vld [vmem:[%s670_s0 + $0x78] sm:$0xff]  ;;  %v459_v2 = vld [vmem:[%s670_s0 + $0x60] sm:$0xff] }
   0x2   :  { %v99_v3 = vsel %vm35_vm0, %v449_v0, -inf  ;;  %v100_v4 = vsel %vm35_vm0, %v454_v1, -inf  ;;  %v468_v5 = vld [vmem:[%s670_s0 + $0x68] sm:$0xff]  ;;  %v90_v6 = vsel %vm35_vm0, %v459_v2, -inf  ;;  %v475_v7 = vld [vmem:[%s670_s0 + $0x50] sm:$0xff]  ;;  %v480_v8 = vld [vmem:[%s670_s0 + $0x58] sm:$0xff] }
   0x3   :  { %v101_v9 = vmax.f32 %v99_v3, %v100_v4  ;;  %v91_v10 = vsel %vm35_vm0, %v468_v5, -inf  ;;  %v81_v11 = vsel %vm35_vm0, %v475_v7, -inf  ;;  %v82_v12 = vsel %vm35_vm0, %v480_v8, -inf  ;;  %v491_v13 = vld [vmem:[%s670_s0 + $0x40] sm:$0xff]  ;;  %v496_v14 = vld [vmem:[%s670_s0 + $0x48] sm:$0xff]  ;;  %v501_v15 = vld [vmem:[%s670_s0 + $0x30] sm:$0xff] }
   0x4   :  { %v92_v16 = vmax.f32 %v90_v6, %v91_v10  ;;  %v83_v17 = vmax.f32 %v81_v11, %v82_v12  ;;  %v72_v18 = vsel %vm35_vm0, %v491_v13, -inf  ;;  %v73_v19 = vsel %vm35_vm0, %v496_v14, -inf  ;;  %v510_v20 = vld [vmem:[%s670_s0 + $0x38] sm:$0xff]  ;;  %v515_v21 = vld [vmem:[%s671_s1] sm:$0x1f]  ;;  %v529_v27 = vld [vmem:[%s670_s0 + $0x28] sm:$0xff] }
   0x5   :  { %v520_v22 = vld [vmem:[%s670_s0 + $0x20] sm:$0xff]  ;;  %v102_v23 = vrot.slane %v101_v9, 4  ;;  %v74_v24 = vmax.f32 %v72_v18, %v73_v19  ;;  %v63_v25 = vsel %vm35_vm0, %v501_v15, -inf  ;;  %v64_v26 = vsel %vm35_vm0, %v510_v20, -inf  ;;  %v538_v36 = vld [vmem:[%s670_s0 + $0x10] sm:$0xff] }
   0x6   :  { %v93_v28 = vrot.slane %v92_v16, 4  ;;  %v84_v29 = vrot.slane %v83_v17, 4  ;;  %v65_v30 = vmax.f32 %v63_v25, %v64_v26  ;;  %v254_v31 = vsel %vm253_vm1, %v515_v21, -inf }
   0x7   :  { %v103_v32 = vmax.f32 %v101_v9, %v102_v23  ;;  %v75_v33 = vrot.slane %v74_v24, 4  ;;  %v255_v34 = vrot.slane %v254_v31, 4  ;;  %v54_v35 = vsel %vm35_vm0, %v520_v22, -inf }
   0x8   :  { %9 = vsyncpa [#allocation3], 0  ;;  %v94_v37 = vmax.f32 %v92_v16, %v93_v28  ;;  %v85_v38 = vmax.f32 %v83_v17, %v84_v29  ;;  %v66_v39 = vrot.slane %v65_v30, 4  ;;  %v55_v40 = vsel %vm35_vm0, %v529_v27, -inf  ;;  %v545_v45 = vld [vmem:[%s670_s0 + $0x18] sm:$0xff]  ;;  %s420_s24 = smov [#allocation2]  }
   0x9   :  { %v104_v41 = vrot.slane %v103_v32, 2  ;;  %v76_v42 = vmax.f32 %v74_v24, %v75_v33  ;;  %v256_v43 = vmax.f32 %v254_v31, %v255_v34  ;;  %v56_v44 = vmax.f32 %v54_v35, %v55_v40  ;;  %s327_s25 = sshll.u32 %s420_s24, 4  ;;  %s329_s28 = sshll.u32 %s674_s4, 4  ;;  %s328_s25 = int_to_ptr.vmem [resolvable:$true] %s327_s25  ;;  %s330_s28 = int_to_ptr.hbm [resolvable:$true] %s329_s28 }
   0xa   :  { %v95_v46 = vrot.slane %v94_v37, 2  ;;  %v86_v47 = vrot.slane %v85_v38, 2  ;;  %v67_v48 = vmax.f32 %v65_v30, %v66_v39  ;;  %v45_v49 = vsel %vm35_vm0, %v538_v36, -inf }
   0xb   :  { %v105_v50 = vmax.f32 %v103_v32, %v104_v41  ;;  %v77_v51 = vrot.slane %v76_v42, 2  ;;  %v257_v52 = vrot.slane %v256_v43, 2  ;;  %v57_v53 = vrot.slane %v56_v44, 4 }
   0xc   :  { %v96_v54 = vmax.f32 %v94_v37, %v95_v46  ;;  %v87_v55 = vmax.f32 %v85_v38, %v86_v47  ;;  %v68_v56 = vrot.slane %v67_v48, 2  ;;  %v46_v57 = vsel %vm35_vm0, %v545_v45, -inf }
   0xd   :  { %v106_v58 = vrot.slane %v105_v50, 1  ;;  %v78_v59 = vmax.f32 %v76_v42, %v77_v51  ;;  %v258_v60 = vmax.f32 %v256_v43, %v257_v52  ;;  %v58_v61 = vmax.f32 %v56_v44, %v57_v53 }
   0xe   :  { %v97_v62 = vrot.slane %v96_v54, 1  ;;  %v88_v63 = vrot.slane %v87_v55, 1  ;;  %v69_v3 = vmax.f32 %v67_v48, %v68_v56  ;;  %v47_v4 = vmax.f32 %v45_v49, %v46_v57 }
   0xf   :  { %v107_v6 = vmax.f32 %v105_v50, %v106_v58  ;;  %v79_v9 = vrot.slane %v78_v59, 1  ;;  %v259_v10 = vrot.slane %v258_v60, 1  ;;  %v59_v17 = vrot.slane %v58_v61, 2 }
  0x10   :  { %v98_v11 = vmax.f32 %v96_v54, %v97_v62  ;;  %v89_v12 = vmax.f32 %v87_v55, %v88_v63  ;;  %v70_v16 = vrot.slane %v69_v3, 1  ;;  %v48_v24 = vrot.slane %v47_v4, 4 }
  0x11   :  { %v122_v18 = vsub.f32 %v449_v0, %v107_v6  ;;  %v123_v19 = vsub.f32 %v454_v1, %v107_v6  ;;  %v80_v23 = vmax.f32 %v78_v59, %v79_v9  ;;  %v260_v33 = vmax.f32 %v258_v60, %v259_v10 }
  0x12   :  { %v120_v25 = vsub.f32 %v459_v2, %v98_v11  ;;  %v121_v26 = vsub.f32 %v468_v5, %v98_v11  ;;  %v118_v28 = vsub.f32 %v475_v7, %v89_v12  ;;  %v119_v29 = vsub.f32 %v480_v8, %v89_v12  ;;  %v562_v2 = vld [vmem:[%s670_s0] sm:$0xff] }
  0x13   :  { %v152_v30 = vmul.f32 1.442695, %v122_v18  ;;  %v154_v31 = vmul.f32 1.442695, %v123_v19  ;;  %v116_v32 = vsub.f32 %v491_v13, %v80_v23  ;;  %v117_v0 = vsub.f32 %v496_v14, %v80_v23  ;;  %v569_v13 = vld [vmem:[%s670_s0 + $0x8] sm:$0xff] }
  0x14   :  { %v148_v34 = vmul.f32 1.442695, %v120_v25  ;;  %v150_v35 = vmul.f32 1.442695, %v121_v26  ;;  %v71_v1 = vmax.f32 %v69_v3, %v70_v16  ;;  %v144_v37 = vmul.f32 1.442695, %v118_v28 }
  0x15   :  { %341 = vpow2.f32 %v152_v30  ;;  %v146_v38 = vmul.f32 1.442695, %v119_v29  ;;  %v140_v5 = vmul.f32 1.442695, %v116_v32  ;;  %v261_v14 = vsub.f32 %v515_v21, %v260_v33 }
  0x16   :  { %343 = vpow2.f32 %v154_v31  ;;  %v114_v7 = vsub.f32 %v501_v15, %v71_v1  ;;  %v115_v8 = vsub.f32 %v510_v20, %v71_v1  ;;  %v60_v39 = vmax.f32 %v58_v61, %v59_v17 }
  0x17   :  { %345 = vpow2.f32 %v148_v34  ;;  %v49_v40 = vmax.f32 %v47_v4, %v48_v24  ;;  %v142_v41 = vmul.f32 1.442695, %v117_v0  ;;  %v36_v43 = vsel %vm35_vm0, %v562_v2, -inf }
  0x18   :  { %347 = vpow2.f32 %v150_v35  ;;  %v136_v42 = vmul.f32 1.442695, %v114_v7  ;;  %v61_v15 = vrot.slane %v60_v39, 1  ;;  %v37_v20 = vsel %vm35_vm0, %v569_v13, -inf }
  0x19   :  { %349 = vpow2.f32 %v144_v37  ;;  %v50_v44 = vrot.slane %v49_v40, 2  ;;  %v138_v46 = vmul.f32 1.442695, %v115_v8  ;;  %v262_v21 = vmul.f32 1.442695, %v261_v14 }
  0x1a   :  { %351 = vpow2.f32 %v146_v38  ;;  %v62_v48 = vmax.f32 %v60_v39, %v61_v15  ;;  %v38_v52 = vmax.f32 %v36_v43, %v37_v20  ;;  %vm288_vm2 = vcmask 1041408  }
  0x1b   :  { %v576_v47 = vpop.eup %341  ;;  %353 = vpow2.f32 %v140_v5  ;;  %v51_v49 = vmax.f32 %v49_v40, %v50_v44  ;;  %vm289_vm3 = vcmask 1042432   ;;  %vm284_vm4 = vcmask 39936  }
  0x1c   :  { %v578_v50 = vpop.eup %343  ;;  %v219_v51 = vsel %vm35_vm0, %v576_v47, 0.0  ;;  %355 = vpow2.f32 %v142_v41  ;;  %v112_v55 = vsub.f32 %v520_v22, %v62_v48  ;;  %v113_v56 = vsub.f32 %v529_v27, %v62_v48 }
  0x1d   :  { %v582_v53 = vpop.eup %345  ;;  %v220_v54 = vsel %vm35_vm0, %v578_v50, 0.0  ;;  %357 = vpow2.f32 %v136_v42  ;;  %v52_v60 = vrot.slane %v51_v49, 1  ;;  %v39_v25 = vrot.slane %v38_v52, 4 }
  0x1e   :  { %v588_v57 = vpop.eup %347  ;;  %v221_v58 = vadd.f32 %v220_v54, %v219_v51  ;;  %v210_v59 = vsel %vm35_vm0, %v582_v53, 0.0  ;;  %359 = vpow2.f32 %v138_v46  ;;  %v132_v63 = vmul.f32 1.442695, %v112_v55 }
  0x1f   :  { %v592_v61 = vpop.eup %349  ;;  %v211_v62 = vsel %vm35_vm0, %v588_v57, 0.0  ;;  %361 = vpow2.f32 %v262_v21  ;;  %v134_v3 = vmul.f32 1.442695, %v113_v56  ;;  %v53_v24 = vmax.f32 %v51_v49, %v52_v60 }
  0x20   :  { %v596_v4 = vpop.eup %351  ;;  %v222_v22 = vrot.slane %v221_v58, 4  ;;  %v212_v27 = vadd.f32 %v211_v62, %v210_v59  ;;  %v201_v6 = vsel %vm35_vm0, %v592_v61, 0.0  ;;  %363 = vpow2.f32 %v132_v63 }
  0x21   :  { %v600_v9 = vpop.eup %353  ;;  %v202_v10 = vsel %vm35_vm0, %v596_v4, 0.0  ;;  %365 = vpow2.f32 %v134_v3  ;;  %v110_v8 = vsub.f32 %v538_v36, %v53_v24  ;;  %v40_v14 = vmax.f32 %v38_v52, %v39_v25 }
  0x22   :  { %v604_v11 = vpop.eup %355  ;;  %v223_v12 = vadd.f32 %v222_v22, %v221_v58  ;;  %v213_v16 = vrot.slane %v212_v27, 4  ;;  %v203_v17 = vadd.f32 %v202_v10, %v201_v6  ;;  %v192_v18 = vsel %vm35_vm0, %v600_v9, 0.0 }
  0x23   :  { %v608_v19 = vpop.eup %357  ;;  %v193_v23 = vsel %vm35_vm0, %v604_v11, 0.0  ;;  %v111_v46 = vsub.f32 %v545_v45, %v53_v24  ;;  %v128_v55 = vmul.f32 1.442695, %v110_v8 }
  0x24   :  { %v612_v26 = vpop.eup %359  ;;  %v224_v28 = vrot.slane %v223_v12, 2  ;;  %v214_v29 = vadd.f32 %v213_v16, %v212_v27  ;;  %v204_v30 = vrot.slane %v203_v17, 4  ;;  %v194_v31 = vadd.f32 %v193_v23, %v192_v18 }
  0x25   :  { %v614_v32 = vpop.eup %361  ;;  %v183_v33 = vsel %vm35_vm0, %v608_v19, 0.0  ;;  %v184_v34 = vsel %vm35_vm0, %v612_v26, 0.0  ;;  %v130_v3 = vmul.f32 1.442695, %v111_v46  ;;  %v41_v16 = vrot.slane %v40_v14, 2 }
  0x26   :  { %v225_v35 = vadd.f32 %v224_v28, %v223_v12  ;;  %v215_v0 = vrot.slane %v214_v29, 2  ;;  %v205_v1 = vadd.f32 %v204_v30, %v203_v17  ;;  %v195_v37 = vrot.slane %v194_v31, 4  ;;  %v620_v38 = vpop.eup %363 }
  0x27   :  { %v185_v5 = vadd.f32 %v184_v34, %v183_v33  ;;  %v264_v7 = vsel %vm253_vm1, %v614_v32, 0.0  ;;  %v625_v43 = vpop.eup %365  ;;  %v174_v20 = vsel %vm35_vm0, %v620_v38, 0.0  ;;  %v42_v25 = vmax.f32 %v40_v14, %v41_v16 }
  0x28   :  { %v226_v39 = vrot.slane %v225_v35, 1  ;;  %v216_v40 = vadd.f32 %v215_v0, %v214_v29  ;;  %v206_v41 = vrot.slane %v205_v1, 2  ;;  %v196_v42 = vadd.f32 %v195_v37, %v194_v31 }
  0x29   :  { %v186_v15 = vrot.slane %v185_v5, 4  ;;  %v265_v44 = vrot.slane %v264_v7, 4  ;;  %v175_v52 = vsel %vm35_vm0, %v625_v43, 0.0 }
  0x2a   :  { %v227_v21 = vadd.f32 %v226_v39, %v225_v35  ;;  %v217_v48 = vrot.slane %v216_v40, 1  ;;  %v207_v49 = vadd.f32 %v206_v41, %v205_v1  ;;  %v197_v51 = vrot.slane %v196_v42, 2 }
  0x2b   :  { %v187_v54 = vadd.f32 %v186_v15, %v185_v5  ;;  %v266_v36 = vadd.f32 %v265_v44, %v264_v7  ;;  %v176_v63 = vadd.f32 %v175_v52, %v174_v20  ;;  %v43_v35 = vrot.slane %v42_v25, 1 }
  0x2c   :  { %367 = vrcp.f32 %v227_v21  ;;  %v218_v56 = vadd.f32 %v217_v48, %v216_v40  ;;  %v208_v58 = vrot.slane %v207_v49, 1  ;;  %v198_v59 = vadd.f32 %v197_v51, %v196_v42 }
  0x2d   :  { %v188_v60 = vrot.slane %v187_v54, 2  ;;  %v267_v62 = vrot.slane %v266_v36, 2  ;;  %v177_v10 = vrot.slane %v176_v63, 4 }
  0x2e   :  { %369 = vrcp.f32 %v218_v56  ;;  %v209_v45 = vadd.f32 %v208_v58, %v207_v49  ;;  %v199_v22 = vrot.slane %v198_v59, 1 }
  0x2f   :  { %v189_v27 = vadd.f32 %v188_v60, %v187_v54  ;;  %v268_v6 = vadd.f32 %v267_v62, %v266_v36  ;;  %371 = vpow2.f32 %v128_v55  ;;  %v178_v23 = vadd.f32 %v177_v10, %v176_v63 }
  0x30   :  { %373 = vrcp.f32 %v209_v45  ;;  %v200_v12 = vadd.f32 %v199_v22, %v198_v59  ;;  %v419_v54 = vmov 65535  }
  0x31   :  { %v190_v17 = vrot.slane %v189_v27, 1  ;;  %v269_v18 = vrot.slane %v268_v6, 1  ;;  %375 = vpow2.f32 %v130_v3  ;;  %v179_v34 = vrot.slane %v178_v23, 2 }
  0x32   :  { %v368_v24 = vpop.eup %367  ;;  %377 = vrcp.f32 %v200_v12  ;;  %v290_v36 = vsel %vm288_vm2, 4294967295, %v419_v54 }
  0x33   :  { %v250_v28 = vmul.f32 %v368_v24, %v576_v47  ;;  %v251_v29 = vmul.f32 %v368_v24, %v578_v50  ;;  %v191_v30 = vadd.f32 %v190_v17, %v189_v27  ;;  %v270_v31 = vadd.f32 %v269_v18, %v268_v6 }
  0x34   :  { %v370_v33 = vpop.eup %369  ;;  %v180_v8 = vadd.f32 %v179_v34, %v178_v23  ;;  %v44_v50 = vmax.f32 %v42_v25, %v43_v35  ;;  %v291_v56 = vsel %vm289_vm3, %v290_v36, 0 }
  0x35   :  { %v634_v0 = vpop.eup %371  ;;  %v281_v1 = vpack.c.bf16 %v251_v29, %v250_v28  ;;  %v248_v37 = vmul.f32 %v370_v33, %v582_v53  ;;  %v249_v5 = vmul.f32 %v370_v33, %v588_v57  ;;  %379 = vrcp.f32 %v191_v30 }
  0x36   :  { %v374_v7 = vpop.eup %373  ;;  %381 = vrcp.f32 %v270_v31  ;;  %v165_v47 = vsel %vm35_vm0, %v634_v0, 0.0  ;;  %v181_v53 = vrot.slane %v180_v8, 1  ;;  %v108_v15 = vsub.f32 %v562_v2, %v44_v50 }
  0x37   :  { %v640_v14 = vpop.eup %375  ;;  %308 = vmatpush.bf16.msra.mxu1 %v281_v1  ;;  %v280_v39 = vpack.c.bf16 %v249_v5, %v248_v37  ;;  %v246_v40 = vmul.f32 %v374_v7, %v592_v61  ;;  %v247_v41 = vmul.f32 %v374_v7, %v596_v4  ;;  %v109_v44 = vsub.f32 %v569_v13, %v44_v50  ;;  %v273_v5 = vld [vmem:[%s672_s2] sm:$0xf] }
  0x38   :  { %v378_v42 = vpop.eup %377  ;;  %v166_v57 = vsel %vm35_vm0, %v640_v14, 0.0  ;;  %v182_v48 = vadd.f32 %v181_v53, %v180_v8  ;;  %v124_v49 = vmul.f32 1.442695, %v108_v15 }
  0x39   :  { %v244_v20 = vmul.f32 %v378_v42, %v600_v9  ;;  %v167_v46 = vadd.f32 %v166_v57, %v165_v47  ;;  %v245_v21 = vmul.f32 %v378_v42, %v604_v11  ;;  %v126_v51 = vmul.f32 1.442695, %v109_v44 }
  0x3a   :  { %v279_v4 = vpack.c.bf16 %v247_v41, %v246_v40  ;;  %383 = vrcp.f32 %v182_v48 }
  0x3b   :  { %v380_v61 = vpop.eup %379  ;;  %309 = vmatpush.bf16.msra.mxu1 %v280_v39  ;;  %v168_v52 = vrot.slane %v167_v46, 4  ;;  %385 = vpow2.f32 %v124_v49  ;;  %v278_v9 = vpack.c.bf16 %v245_v21, %v244_v20 }
  0x3c   :  { %v382_v55 = vpop.eup %381  ;;  %387 = vpow2.f32 %v126_v51  ;;  %v242_v11 = vmul.f32 %v380_v61, %v608_v19  ;;  %v243_v58 = vmul.f32 %v380_v61, %v612_v26  ;;  %v282_v19 = vld [vmem:[%s673_s3] sm:$0xf] }
  0x3d   :  { %v272_v2 = vmul.f32 %v382_v55, %v614_v32  ;;  %v169_v13 = vadd.f32 %v168_v52, %v167_v46 }
  0x3e   :  { %v277_v22 = vpack.c.bf16 %v243_v58, %v242_v11 }
  0x3f   :  { %310 = vmatpush.bf16.msra.mxu1 %v279_v4  ;;  %v283_v59 = vpack.c.bf16 %v272_v2, %v272_v2  ;;  %v170_v60 = vrot.slane %v169_v13, 2 }
  0x40   :  { %v384_v3 = vpop.eup %383 }
  0x41   :  { %v293_v62 = vand.u32 %v291_v56, %v283_v59  ;;  %v171_v63 = vadd.f32 %v170_v60, %v169_v13  ;;  %v386_v45 = vpop.eup %385  ;;  %v240_v32 = vmul.f32 %v384_v3, %v620_v38  ;;  %v241_v27 = vmul.f32 %v384_v3, %v625_v43 }
  0x42   :  { %v388_v26 = vpop.eup %387  ;;  %v156_v10 = vsel %vm35_vm0, %v386_v45, 0.0 }
  0x43   :  { %311 = vmatpush.bf16.msra.mxu1 %v278_v9  ;;  %302 = vmatpush.bf16.msra.mxu0 %v293_v62  ;;  %v172_v6 = vrot.slane %v171_v63, 1  ;;  %v157_v16 = vsel %vm35_vm0, %v388_v26, 0.0  ;;  %v276_v18 = vpack.c.bf16 %v241_v27, %v240_v32 }
  0x44   :  { %v158_v17 = vadd.f32 %v157_v16, %v156_v10 }
  0x45   :  { %v173_v12 = vadd.f32 %v172_v6, %v171_v63 }
  0x46   :  { %338 = vmatmul.msk.bf16.vlgmr.msra.gmra.mxu0 %vm284_vm4, %v282_v19  ;;  %v159_v23 = vrot.slane %v158_v17, 4 }
  0x47   :  { %312 = vmatpush.bf16.msra.mxu1 %v277_v22  ;;  %389 = vrcp.f32 %v173_v12 }
  0x48   :  { %v160_v38 = vadd.f32 %v159_v23, %v158_v17 }
  0x4a   :  { %v161_v43 = vrot.slane %v160_v38, 2 }
  0x4b   :  { %313 = vmatpush.bf16.msra.mxu1 %v276_v18 }
  0x4c   :  { %v162_v29 = vadd.f32 %v161_v43, %v160_v38 }
  0x4d   :  { %v390_v24 = vpop.eup %389 }
  0x4e   :  { %v238_v25 = vmul.f32 %v390_v24, %v634_v0  ;;  %v239_v28 = vmul.f32 %v390_v24, %v640_v14  ;;  %v163_v31 = vrot.slane %v162_v29, 1 }
  0x50   :  { %v275_v30 = vpack.c.bf16 %v239_v28, %v238_v25  ;;  %v164_v33 = vadd.f32 %v163_v31, %v162_v29 }
  0x52   :  { %314 = vmatpush.bf16.msra.mxu1 %v275_v30  ;;  %391 = vrcp.f32 %v164_v33 }
  0x58   :  { %v392_v34 = vpop.eup %391 }
  0x59   :  { %v236_v35 = vmul.f32 %v392_v34, %v386_v45  ;;  %v237_v1 = vmul.f32 %v392_v34, %v388_v26 }
  0x5b   :  { %v274_v37 = vpack.c.bf16 %v237_v1, %v236_v35 }
  0x5d   :  { %315 = vmatpush.bf16.msra.mxu1 %v274_v37 }
  0x60   :  { %316 = vmatmul.bf16.vlgmr.msra.gmra.mxu1 %v273_v5 }
  0xc3   :  { %v304_v7 = vpop.f32.mrf.mxu0 }
  0xcb   :  { %v306_v0 = vpop.f32.mrf.mxu0 }
  0xdd   :  { %v317_v8 = vpop.f32.mrf.mxu1 }
  0xde   :  { %v318_v47 = vadd.f32 %v317_v8, %v304_v7 }
  0xe0   :  { %321 = vst.msk [vmem:[#allocation2] sm:$0xff] %vm35_vm0, %v318_v47 }
  0xe1   :  { %332 = dma.vmem_to_hbm [thread:$0]  %s328_s25, 128, %s330_s28, [#allocation3]  }
  0xe5   :  { %v319_v50 = vpop.f32.mrf.mxu1 }
  0xe6   :  { %417 = dma.done.wait [#allocation3], 128  }
  0xe7   :  { %418 = vsyncadd [#allocation3], 4294967168 }
  0xe8   :  { %337 = vsyncpa [#allocation3], 1 }

</bundles_post_ra>
